<compile_context>
chip_gen: v7x
topology: tpu7x:2x2x1
jax: 0.10.0
libtpu: 0.0.40
codegen_flags: <defaults>
</compile_context>

<pallas_src>
import jax
import jax.numpy as jnp
from jax import lax
from jax.experimental import pallas as pl
from jax.experimental.pallas import tpu as pltpu


def _round_up(n, m):
    return ((n + m - 1) // m) * m


def _make_double_conv_kernel(H, W, mm_dtype):
    M = H * W

    def stacked_patches(src, masks_ref):
        """(C, M) -> (9*C, M): stacked, boundary-masked 3x3 patches (im2col-lite).

        Factored shifts: 2 row rolls then 2 column rolls of the stacked block (4 XLU
        rolls total).  Masks realize the implicit zero padding; row masks are applied
        before the column rolls, column masks after -- any position where the row mask
        was evaluated at the "wrong" row (column wrap) is zeroed by the column mask, so
        the product is exact.  Stacking order is dx-major, dy-minor, channel-minor and
        matches the (Cout, 9*Cin_pad) weight layout built in the wrapper.
        """
        mh0 = masks_ref[0:1, :]          # h >= 1      (tap dy = -1 valid)
        mh2 = masks_ref[1:2, :]          # h <= H - 2  (tap dy = +1 valid)
        mw0 = masks_ref[2:3, :]          # w >= 1      (tap dx = -1 valid)
        mw2 = masks_ref[3:4, :]          # w <= W - 2  (tap dx = +1 valid)

        up = pltpu.roll(src, shift=W, axis=1) * mh0          # patch[m] = src[m - W]
        down = pltpu.roll(src, shift=M - W, axis=1) * mh2    # patch[m] = src[m + W]
        rows = jnp.concatenate([up, src, down], axis=0)      # (3C, M), dy = -1, 0, +1

        left = pltpu.roll(rows, shift=1, axis=1) * mw0       # patch[m] = rows[m - 1]
        right = pltpu.roll(rows, shift=M - 1, axis=1) * mw2  # patch[m] = rows[m + 1]
        return jnp.concatenate([left, rows, right], axis=0)  # (9C, M), dx = -1, 0, +1

    def kernel(x_ref, masks_ref, w1_ref, b1_ref, w2_ref, b2_ref, o_ref):
        x = x_ref[0]                                          # (Cin_pad, M) f32, lane-dense
        # conv1 (+ folded BN1) + ReLU: one K = 9*Cin_pad MXU matmul, f32 accumulate.
        p1 = stacked_patches(x, masks_ref).astype(mm_dtype)
        h1 = jnp.maximum(
            jnp.dot(w1_ref[...], p1, preferred_element_type=jnp.float32) + b1_ref[...],
            0.0)
        # conv2 (+ folded BN2) + ReLU -- conv1 activation never leaves VMEM.
        p2 = stacked_patches(h1, masks_ref).astype(mm_dtype)
        h2 = jnp.maximum(
            jnp.dot(w2_ref[...], p2, preferred_element_type=jnp.float32) + b2_ref[...],
            0.0)
        o_ref[0] = h2.astype(o_ref.dtype)

    return kernel


def _fold_bn(w, b, gamma, beta, mean, var, eps):
    scale = gamma / jnp.sqrt(var + eps)                       # (Cout,)
    w_eff = w * scale[:, None, None, None]
    b_eff = beta + (b - mean) * scale
    return w_eff, b_eff


def _stack_weight(w_eff, cout_pad, cin_pad, mm_dtype):
    """(Cout, Cin, 3, 3) -> (Cout_pad, 9*Cin_pad), column order (dx, dy, cin)."""
    co, ci = w_eff.shape[0], w_eff.shape[1]
    w_pad = jnp.zeros((cout_pad, cin_pad, 3, 3), jnp.float32).at[:co, :ci].set(
        w_eff.astype(jnp.float32))
    # (Cout, kx, ky, Cin) row-major flatten -> idx = (dx+1)*3*Cin_pad + (dy+1)*Cin_pad + ci,
    # matching the patch stacking order in the kernel.
    return jnp.transpose(w_pad, (0, 3, 2, 1)).reshape(cout_pad, 9 * cin_pad).astype(mm_dtype)


def _pad_bias(b_eff, cout_pad):
    return jnp.zeros((cout_pad, 1), jnp.float32).at[:b_eff.shape[0], 0].set(
        b_eff.astype(jnp.float32))


def double_conv_forward(x_nchw, params, *, eps=1e-5, matmul_dtype=jnp.bfloat16):
    """Forward of (Conv3x3 pad=1 => BN => ReLU) * 2, eval-mode BN.

    x_nchw: (N, Cin, H, W) float32, params: PyTorch-layout conv/BN parameters.
    matmul_dtype: dtype of the MXU operands (bf16 default; f32 accumulate either way).
    returns (N, Cout, H, W).
    """
    N, c_in, H, W = x_nchw.shape
    M = H * W

    w1_eff, b1_eff = _fold_bn(params["w1"], params["b1"], params["gamma1"],
                              params["beta1"], params["mean1"], params["var1"], eps)
    w2_eff, b2_eff = _fold_bn(params["w2"], params["b2"], params["gamma2"],
                              params["beta2"], params["mean2"], params["var2"], eps)
    c_mid = w1_eff.shape[0]
    c_out = w2_eff.shape[0]

    # Pad channel counts to the f32 sublane multiple (8). Padded weight rows/cols and
    # biases are zero, so the padded channels carry exact zeros through both layers.
    cin_p = _round_up(c_in, 8)
    cmid_p = _round_up(c_mid, 8)
    cout_p = _round_up(c_out, 8)

    w1_s = _stack_weight(w1_eff, cmid_p, cin_p, matmul_dtype)
    w2_s = _stack_weight(w2_eff, cout_p, cmid_p, matmul_dtype)
    b1_c = _pad_bias(b1_eff, cmid_p)
    b2_c = _pad_bias(b2_eff, cout_p)

    # Channel-major, lane-dense activations: NCHW is already channel-major; just flatten H*W.
    x_flat = jnp.zeros((N, cin_p, M), jnp.float32).at[:, :c_in, :].set(
        x_nchw.reshape(N, c_in, M).astype(jnp.float32))

    # Precomputed boundary masks: one resident (8, M) VMEM block (rows 4..7 are padding).
    pos = jnp.arange(M, dtype=jnp.int32)
    hh, ww = pos // W, pos % W
    masks = jnp.concatenate([
        jnp.stack([hh >= 1, hh <= H - 2, ww >= 1, ww <= W - 2], axis=0).astype(jnp.float32),
        jnp.ones((4, M), jnp.float32),
    ], axis=0)

    flops = 2 * N * M * 9 * (cin_p * cmid_p + cmid_p * cout_p)
    bytes_accessed = 4 * (N * cin_p * M + N * cout_p * M + 8 * M) \
        + w1_s.dtype.itemsize * w1_s.size + w2_s.dtype.itemsize * w2_s.size \
        + 4 * (cmid_p + cout_p)

    kernel = _make_double_conv_kernel(H, W, matmul_dtype)

    out = pl.pallas_call(
        kernel,
        out_shape=jax.ShapeDtypeStruct((N, cout_p, M), x_nchw.dtype),
        grid_spec=pltpu.PrefetchScalarGridSpec(
            num_scalar_prefetch=0,
            grid=(N,),                                        # >= 2 steps: feeds both v7x TCs
            in_specs=[
                pl.BlockSpec((1, cin_p, M), lambda n: (n, 0, 0)),       # one image, lane-dense
                pl.BlockSpec((8, M), lambda n: (0, 0)),                 # resident boundary masks
                pl.BlockSpec((cmid_p, 9 * cin_p), lambda n: (0, 0)),    # resident dense weights
                pl.BlockSpec((cmid_p, 1), lambda n: (0, 0)),            # resident bias
                pl.BlockSpec((cout_p, 9 * cmid_p), lambda n: (0, 0)),
                pl.BlockSpec((cout_p, 1), lambda n: (0, 0)),
            ],
            out_specs=pl.BlockSpec((1, cout_p, M), lambda n: (n, 0, 0)),
        ),
        compiler_params=pltpu.CompilerParams(
            dimension_semantics=("parallel",),
        ),
        cost_estimate=pl.CostEstimate(flops=flops, transcendentals=0,
                                      bytes_accessed=int(bytes_accessed)),
    )(x_flat, masks, w1_s, b1_c, w2_s, b2_c)

    return out[:, :c_out, :].reshape(N, c_out, H, W)


if __name__ == "__main__":
    key = jax.random.PRNGKey(0)
    ks = jax.random.split(key, 13)

    N, in_ch, H, W = 2, 4, 16, 16
    out_ch = 8
    eps = 1e-5

    x = jax.random.normal(ks[0], (N, in_ch, H, W), dtype=jnp.float32)

    def conv_init(kw, kb, co, ci):
        bound = 1.0 / (ci * 9) ** 0.5            # nn.Conv2d default: U(-1/sqrt(fan_in), +)
        w = jax.random.uniform(kw, (co, ci, 3, 3), minval=-bound, maxval=bound,
                               dtype=jnp.float32)
        b = jax.random.uniform(kb, (co,), minval=-bound, maxval=bound, dtype=jnp.float32)
        return w, b

    w1, b1 = conv_init(ks[1], ks[2], out_ch, in_ch)
    w2, b2 = conv_init(ks[3], ks[4], out_ch, out_ch)

    params = dict(
        w1=w1, b1=b1,
        gamma1=jax.random.uniform(ks[5], (out_ch,), minval=0.5, maxval=1.5, dtype=jnp.float32),
        beta1=jax.random.uniform(ks[6], (out_ch,), minval=-0.5, maxval=0.5, dtype=jnp.float32),
        mean1=jax.random.uniform(ks[7], (out_ch,), minval=-0.5, maxval=0.5, dtype=jnp.float32),
        var1=jax.random.uniform(ks[8], (out_ch,), minval=0.5, maxval=1.5, dtype=jnp.float32),
        w2=w2, b2=b2,
        gamma2=jax.random.uniform(ks[9], (out_ch,), minval=0.5, maxval=1.5, dtype=jnp.float32),
        beta2=jax.random.uniform(ks[10], (out_ch,), minval=-0.5, maxval=0.5, dtype=jnp.float32),
        mean2=jax.random.uniform(ks[11], (out_ch,), minval=-0.5, maxval=0.5, dtype=jnp.float32),
        var2=jax.random.uniform(ks[12], (out_ch,), minval=0.5, maxval=1.5, dtype=jnp.float32),
    )

    # Plain-JAX reference: Conv3x3(pad=1) -> eval-mode BN -> ReLU, twice, NCHW throughout.
    def ref_block(xx, w, b, gamma, beta, mean, var):
        yy = lax.conv_general_dilated(xx, w, (1, 1), "SAME",
                                      dimension_numbers=("NCHW", "OIHW", "NCHW"),
                                      precision=lax.Precision.HIGHEST)
        yy = yy + b[None, :, None, None]
        yy = (yy - mean[None, :, None, None]) / jnp.sqrt(var[None, :, None, None] + eps)
        yy = gamma[None, :, None, None] * yy + beta[None, :, None, None]
        return jnp.maximum(yy, 0.0)

    y_ref = ref_block(x, params["w1"], params["b1"], params["gamma1"], params["beta1"],
                      params["mean1"], params["var1"])
    y_ref = ref_block(y_ref, params["w2"], params["b2"], params["gamma2"], params["beta2"],
                      params["mean2"], params["var2"])

    # Structural-correctness check: f32 matmul operands (tight tolerance).
    y_f32 = double_conv_forward(x, params, eps=eps, matmul_dtype=jnp.float32)
    jax.block_until_ready(y_f32)
    assert y_f32.shape == (N, out_ch, H, W)
    err_f32 = float(jnp.max(jnp.abs(y_f32 - y_ref)))
    assert jnp.allclose(y_f32, y_ref, atol=1e-3, rtol=1e-3), err_f32

    # Performance path: bf16 MXU operands, f32 accumulate/epilogue (looser tolerance:
    # BN-folded weights amplify bf16 operand rounding across the two convolutions).
    y_bf16 = double_conv_forward(x, params, eps=eps, matmul_dtype=jnp.bfloat16)
    jax.block_until_ready(y_bf16)
    assert y_bf16.shape == (N, out_ch, H, W)
    err_bf16 = float(jnp.max(jnp.abs(y_bf16 - y_ref)))
    assert jnp.allclose(y_bf16, y_ref, atol=1e-1, rtol=1e-1), err_bf16

    print("KERNEL_OK")
</pallas_src>

<mosaic_0001>
module attributes {stable_mosaic.version = 11 : i64} {
  func.func @kernel(%arg0: i32, %arg1: memref<1x8x256xf32, #tpu.memory_space<vmem>>, %arg2: memref<8x256xf32, #tpu.memory_space<vmem>>, %arg3: memref<8x72xf32, #tpu.memory_space<vmem>>, %arg4: memref<8x1xf32, #tpu.memory_space<vmem>>, %arg5: memref<8x72xf32, #tpu.memory_space<vmem>>, %arg6: memref<8x1xf32, #tpu.memory_space<vmem>>, %arg7: memref<1x8x256xf32, #tpu.memory_space<vmem>>) attributes {dimension_semantics = [#tpu.dimension_semantics<parallel>], iteration_bounds = array<i64: 2>, scalar_prefetch = 0 : i64, scratch_operands = 0 : i64, tpu.core_type = #tpu.core_type<tc>, window_params = [{transform_indices = @transform_0, window_bounds = array<i64: 1, 8, 256>}, {pipeline_mode = #tpu.pipeline_mode<synchronous>, transform_indices = @transform_1, window_bounds = array<i64: 8, 256>}, {pipeline_mode = #tpu.pipeline_mode<synchronous>, transform_indices = @transform_2, window_bounds = array<i64: 8, 72>}, {pipeline_mode = #tpu.pipeline_mode<synchronous>, transform_indices = @transform_3, window_bounds = array<i64: 8, 1>}, {pipeline_mode = #tpu.pipeline_mode<synchronous>, transform_indices = @transform_4, window_bounds = array<i64: 8, 72>}, {pipeline_mode = #tpu.pipeline_mode<synchronous>, transform_indices = @transform_5, window_bounds = array<i64: 8, 1>}, {transform_indices = @transform_6, window_bounds = array<i64: 1, 8, 256>}]} {
    %c0 = arith.constant 0 : index
    %c0_0 = arith.constant 0 : index
    %c0_1 = arith.constant 0 : index
    %0 = vector.load %arg1[%c0, %c0_0, %c0_1] : memref<1x8x256xf32, #tpu.memory_space<vmem>>, vector<1x8x256xf32>
    %1 = vector.shape_cast %0 : vector<1x8x256xf32> to vector<8x256xf32>
    %c0_2 = arith.constant 0 : index
    %c0_3 = arith.constant 0 : index
    %2 = vector.load %arg2[%c0_2, %c0_3] : memref<8x256xf32, #tpu.memory_space<vmem>>, vector<1x256xf32>
    %c1 = arith.constant 1 : index
    %c0_4 = arith.constant 0 : index
    %3 = vector.load %arg2[%c1, %c0_4] : memref<8x256xf32, #tpu.memory_space<vmem>>, vector<1x256xf32>
    %c2 = arith.constant 2 : index
    %c0_5 = arith.constant 0 : index
    %4 = vector.load %arg2[%c2, %c0_5] : memref<8x256xf32, #tpu.memory_space<vmem>>, vector<1x256xf32>
    %c3 = arith.constant 3 : index
    %c0_6 = arith.constant 0 : index
    %5 = vector.load %arg2[%c3, %c0_6] : memref<8x256xf32, #tpu.memory_space<vmem>>, vector<1x256xf32>
    %c16_i32 = arith.constant 16 : i32
    %6 = tpu.dynamic_rotate %1 by %c16_i32 dim 1 : vector<8x256xf32>, i32 -> vector<8x256xf32>
    %7 = vector.broadcast %2 : vector<1x256xf32> to vector<8x256xf32>
    %8 = arith.mulf %6, %7 : vector<8x256xf32>
    %c240_i32 = arith.constant 240 : i32
    %9 = tpu.dynamic_rotate %1 by %c240_i32 dim 1 : vector<8x256xf32>, i32 -> vector<8x256xf32>
    %10 = vector.broadcast %3 : vector<1x256xf32> to vector<8x256xf32>
    %11 = arith.mulf %9, %10 : vector<8x256xf32>
    %12 = tpu.concatenate %8, %1, %11 in 0 : vector<8x256xf32>, vector<8x256xf32>, vector<8x256xf32> -> vector<24x256xf32>
    %c1_i32 = arith.constant 1 : i32
    %13 = tpu.dynamic_rotate %12 by %c1_i32 dim 1 : vector<24x256xf32>, i32 -> vector<24x256xf32>
    %14 = vector.broadcast %4 : vector<1x256xf32> to vector<24x256xf32>
    %15 = arith.mulf %13, %14 : vector<24x256xf32>
    %c255_i32 = arith.constant 255 : i32
    %16 = tpu.dynamic_rotate %12 by %c255_i32 dim 1 : vector<24x256xf32>, i32 -> vector<24x256xf32>
    %17 = vector.broadcast %5 : vector<1x256xf32> to vector<24x256xf32>
    %18 = arith.mulf %16, %17 : vector<24x256xf32>
    %19 = tpu.concatenate %15, %12, %18 in 0 : vector<24x256xf32>, vector<24x256xf32>, vector<24x256xf32> -> vector<72x256xf32>
    %c0_7 = arith.constant 0 : index
    %c0_8 = arith.constant 0 : index
    %20 = vector.load %arg3[%c0_7, %c0_8] : memref<8x72xf32, #tpu.memory_space<vmem>>, vector<8x72xf32>
    %cst = arith.constant dense<0.000000e+00> : vector<8x256xf32>
    %21 = tpu.matmul %20, %19, %cst {dimension_numbers = #tpu.dot_dimension_numbers<[1], [0], [0], [1], [0, 0, 1, 1], [], []>} : vector<8x72xf32>, vector<72x256xf32>, vector<8x256xf32> -> vector<8x256xf32>
    %c0_9 = arith.constant 0 : index
    %c0_10 = arith.constant 0 : index
    %22 = vector.load %arg4[%c0_9, %c0_10] : memref<8x1xf32, #tpu.memory_space<vmem>>, vector<8x1xf32>
    %23 = vector.broadcast %22 : vector<8x1xf32> to vector<8x256xf32>
    %24 = arith.addf %21, %23 : vector<8x256xf32>
    %cst_11 = arith.constant 0.000000e+00 : f32
    %25 = vector.broadcast %cst_11 : f32 to vector<8x256xf32>
    %26 = arith.maximumf %24, %25 : vector<8x256xf32>
    %c0_12 = arith.constant 0 : index
    %c0_13 = arith.constant 0 : index
    %27 = vector.load %arg2[%c0_12, %c0_13] : memref<8x256xf32, #tpu.memory_space<vmem>>, vector<1x256xf32>
    %c1_14 = arith.constant 1 : index
    %c0_15 = arith.constant 0 : index
    %28 = vector.load %arg2[%c1_14, %c0_15] : memref<8x256xf32, #tpu.memory_space<vmem>>, vector<1x256xf32>
    %c2_16 = arith.constant 2 : index
    %c0_17 = arith.constant 0 : index
    %29 = vector.load %arg2[%c2_16, %c0_17] : memref<8x256xf32, #tpu.memory_space<vmem>>, vector<1x256xf32>
    %c3_18 = arith.constant 3 : index
    %c0_19 = arith.constant 0 : index
    %30 = vector.load %arg2[%c3_18, %c0_19] : memref<8x256xf32, #tpu.memory_space<vmem>>, vector<1x256xf32>
    %c16_i32_20 = arith.constant 16 : i32
    %31 = tpu.dynamic_rotate %26 by %c16_i32_20 dim 1 : vector<8x256xf32>, i32 -> vector<8x256xf32>
    %32 = vector.broadcast %27 : vector<1x256xf32> to vector<8x256xf32>
    %33 = arith.mulf %31, %32 : vector<8x256xf32>
    %c240_i32_21 = arith.constant 240 : i32
    %34 = tpu.dynamic_rotate %26 by %c240_i32_21 dim 1 : vector<8x256xf32>, i32 -> vector<8x256xf32>
    %35 = vector.broadcast %28 : vector<1x256xf32> to vector<8x256xf32>
    %36 = arith.mulf %34, %35 : vector<8x256xf32>
    %37 = tpu.concatenate %33, %26, %36 in 0 : vector<8x256xf32>, vector<8x256xf32>, vector<8x256xf32> -> vector<24x256xf32>
    %c1_i32_22 = arith.constant 1 : i32
    %38 = tpu.dynamic_rotate %37 by %c1_i32_22 dim 1 : vector<24x256xf32>, i32 -> vector<24x256xf32>
    %39 = vector.broadcast %29 : vector<1x256xf32> to vector<24x256xf32>
    %40 = arith.mulf %38, %39 : vector<24x256xf32>
    %c255_i32_23 = arith.constant 255 : i32
    %41 = tpu.dynamic_rotate %37 by %c255_i32_23 dim 1 : vector<24x256xf32>, i32 -> vector<24x256xf32>
    %42 = vector.broadcast %30 : vector<1x256xf32> to vector<24x256xf32>
    %43 = arith.mulf %41, %42 : vector<24x256xf32>
    %44 = tpu.concatenate %40, %37, %43 in 0 : vector<24x256xf32>, vector<24x256xf32>, vector<24x256xf32> -> vector<72x256xf32>
    %c0_24 = arith.constant 0 : index
    %c0_25 = arith.constant 0 : index
    %45 = vector.load %arg5[%c0_24, %c0_25] : memref<8x72xf32, #tpu.memory_space<vmem>>, vector<8x72xf32>
    %cst_26 = arith.constant dense<0.000000e+00> : vector<8x256xf32>
    %46 = tpu.matmul %45, %44, %cst_26 {dimension_numbers = #tpu.dot_dimension_numbers<[1], [0], [0], [1], [0, 0, 1, 1], [], []>} : vector<8x72xf32>, vector<72x256xf32>, vector<8x256xf32> -> vector<8x256xf32>
    %c0_27 = arith.constant 0 : index
    %c0_28 = arith.constant 0 : index
    %47 = vector.load %arg6[%c0_27, %c0_28] : memref<8x1xf32, #tpu.memory_space<vmem>>, vector<8x1xf32>
    %48 = vector.broadcast %47 : vector<8x1xf32> to vector<8x256xf32>
    %49 = arith.addf %46, %48 : vector<8x256xf32>
    %cst_29 = arith.constant 0.000000e+00 : f32
    %50 = vector.broadcast %cst_29 : f32 to vector<8x256xf32>
    %51 = arith.maximumf %49, %50 : vector<8x256xf32>
    %c0_30 = arith.constant 0 : index
    %c0_31 = arith.constant 0 : index
    %c0_32 = arith.constant 0 : index
    %52 = vector.load %arg7[%c0_30, %c0_31, %c0_32] : memref<1x8x256xf32, #tpu.memory_space<vmem>>, vector<1x8x256xf32>
    %53 = vector.shape_cast %52 : vector<1x8x256xf32> to vector<8x256xf32>
    %54 = vector.shape_cast %51 : vector<8x256xf32> to vector<1x8x256xf32>
    tpu.vector_store %arg7[%c0_30, %c0_31, %c0_32], %54 {strides = array<i32>} : memref<1x8x256xf32, #tpu.memory_space<vmem>>, vector<1x8x256xf32>,
    return
  }
  func.func @transform_0(%arg0: i32) -> (i32, i32, i32) {
    %c0_i32 = arith.constant 0 : i32
    %c0_i32_0 = arith.constant 0 : i32
    %c0_i32_1 = arith.constant 0 : i32
    return %arg0, %c0_i32, %c0_i32_0 : i32, i32, i32
  }
  func.func @transform_1(%arg0: i32) -> (i32, i32) {
    %c0_i32 = arith.constant 0 : i32
    %c0_i32_0 = arith.constant 0 : i32
    %c0_i32_1 = arith.constant 0 : i32
    return %c0_i32, %c0_i32_0 : i32, i32
  }
  func.func @transform_2(%arg0: i32) -> (i32, i32) {
    %c0_i32 = arith.constant 0 : i32
    %c0_i32_0 = arith.constant 0 : i32
    %c0_i32_1 = arith.constant 0 : i32
    return %c0_i32, %c0_i32_0 : i32, i32
  }
  func.func @transform_3(%arg0: i32) -> (i32, i32) {
    %c0_i32 = arith.constant 0 : i32
    %c0_i32_0 = arith.constant 0 : i32
    %c0_i32_1 = arith.constant 0 : i32
    return %c0_i32, %c0_i32_0 : i32, i32
  }
  func.func @transform_4(%arg0: i32) -> (i32, i32) {
    %c0_i32 = arith.constant 0 : i32
    %c0_i32_0 = arith.constant 0 : i32
    %c0_i32_1 = arith.constant 0 : i32
    return %c0_i32, %c0_i32_0 : i32, i32
  }
  func.func @transform_5(%arg0: i32) -> (i32, i32) {
    %c0_i32 = arith.constant 0 : i32
    %c0_i32_0 = arith.constant 0 : i32
    %c0_i32_1 = arith.constant 0 : i32
    return %c0_i32, %c0_i32_0 : i32, i32
  }
  func.func @transform_6(%arg0: i32) -> (i32, i32, i32) {
    %c0_i32 = arith.constant 0 : i32
    %c0_i32_0 = arith.constant 0 : i32
    %c0_i32_1 = arith.constant 0 : i32
    return %arg0, %c0_i32, %c0_i32_0 : i32, i32, i32
  }
}

</mosaic_0001>

<bundles_post_ra>
// kernel: tpu_custom_call.1
= control target key start
LH: loop header
LB: loop body
LE: loop exit
PB: predicated region body
PF: predicated region fallthrough
CT: control target
= control target key end

     0   :  { %11 = vsyncpa [#allocation3], 0  ;;  %s1345_s0 = inlined_call_operand.hbm [shape: f32[2,8,256], index: 0, kind: input, shape index: {}]   ;;  %s1346_s1 = inlined_call_operand.vmem [shape: f32[8,256], index: 1, kind: input, shape index: {}]   ;;  %s1347_s2 = inlined_call_operand.vmem [shape: f32[8,72], index: 2, kind: input, shape index: {}]   ;;  %s1348_s3 = inlined_call_operand.vmem [shape: f32[8,1], index: 3, kind: input, shape index: {}]   ;;  %s1349_s4 = inlined_call_operand.vmem [shape: f32[8,72], index: 4, kind: input, shape index: {}]   ;;  %s1350_s5 = inlined_call_operand.vmem [shape: f32[8,1], index: 5, kind: input, shape index: {}]   ;;  %s1351_s6 = inlined_call_operand.hbm [shape: f32[2,8,256], index: 6, kind: output, shape index: {}]  }
   0x1   :  { %13 = vsyncpa [#allocation3 + $0x1], 0 }
   0x2   :  { %14 = vsyncpa [#allocation4], 0 }
   0x3   :  { %16 = vsyncpa [#allocation4 + $0x1], 0  ;;  %s956_s21 = smov 0   ;;  %s958_s22 = smov 0  }
   0x4   :  { %s960_s23 = smov 0   ;;  %s962_s24 = smov 0  }
   0x5 LB: > { %s977_s25 = sadd.s32 4294967295, %s911_s24   ;;  %s709_s26 = sadd.s32 4294967294, %s911_s24   ;;  %s911_s24 = sphi %s962_s24, %s1366_s24   ;;  %s907_s23 = sphi %s960_s23, %s1365_s23   ;;  %s903_s22 = sphi %s958_s22, %s1364_s22   ;;  %s899_s21 = sphi %s956_s21, %s1363_s21  }
   0x6   : > { %s981_s27 = sadd.s32 1, %s911_s24   ;;  %s29_s28 = sadd.s32 1, %s907_s23 }
   0x7   : > { %s26_s29 = ssub.s32 %s911_s24, %s981_s27  ;;  %p36_p0 = scmp.ne.s32.totalorder %s907_s23, %s903_s22 }
   0x8   : > { %p27_p1 = scmp.eq.s32.totalorder %s26_s29, 0  ;;  %p37_p2 = scmp.eq.s32.totalorder %s911_s24, 0 }
   0x9   : > { %p42_p3 = scmp.ne.s32.totalorder %s903_s22, %s899_s21  ;;  %p43_p4 = scmp.eq.s32.totalorder %s977_s25, 0 }
   0xa   : > { %s993_s30 = scalar_select %p27_p1, %s907_s23, %s29_s28  }
   0xb   : > { %p995_p5 = por %p37_p2, %p36_p0  ;;  %p999_p6 = por %p43_p4, %p42_p3 }
   0xc   : > { %p171_p7 = scmp.eq.s32.totalorder %s977_s25, 1  ;;  %p177_p8 = scmp.eq.s32.totalorder %s709_s26, 1 }
   0xd   : > { %p774_p10 = scmp.lt.s32.totalorder %s911_s24, 2  ;;  %s212_s11 = sand.u32 1, %s907_s23  }
   0xe   : > { %p1006_p11 = por %p171_p7, %p36_p0  ;;  %p1010_p12 = por %p177_p8, %p42_p3 }
   0xf   : > { %s728_s12 = sshll.u32 %s911_s24, 8  ;;  %s712_s13 = sshll.u32 %s212_s11, 4 }
  0x10   : > { %s1355_s9 = scalar_select %p1006_p11, 1, 0 }
  0x11   : > { %s1356_s10 = scalar_select %p1010_p12, 1, 0 }
  0x12   : > { %s1019_s16 = scalar_lea.hbm %s1345_s0, %s728_s12  ;;  %s216_s17 = scalar_lea.vmem [#allocation2], %s712_s13 }
  0x13   : > { %s224_s18 = sshll.u32 %s216_s17, 4  ;;  %p1023_p13 = pnand %p774_p10, %p995_p5  ;;  %s1027_s18 = int_to_ptr.vmem [resolvable:$true] %s224_s18 }
  0x14   : > { %s213_s20 = scalar_lea.sflag [#allocation3], %s212_s11  ;;  %s815_s26 = scalar_lea.hbm %s1019_s16, 256 }
  0x15   : > { %p816_p2 = scmp.ne.s32.totalorder %s1019_s16, %s815_s26  ;;  %p817_p3 = pneg %p1023_p13 }
  0x16   : > { %s820_s7 = scalar_lea.hbm %s1345_s0, 512  ;;  %p821_p5 = scmp.lt.u32.totalorder %s1019_s16, %s1345_s0 }
  0x17   : > { %p818_p4 = pnand %p817_p3, %p816_p2  ;;  %p822_p8 = scmp.lt.u32.totalorder %s820_s7, %s815_s26 }
  0x18   : > { %p824_p9 = scmp.lt.u32.totalorder %s815_s26, %s1019_s16 }
  0x19   : > { %p819_p7 = pneg %p818_p4  ;;  %p823_p10 = por %p822_p8, %p821_p5 }
  0x1b   : > { %p825_p0 = por %p824_p9, %p823_p10 }
  0x1d   : > { %p826_p1 = pnand %p825_p0, %p819_p7 }
  0x1f   : > { %829 = shalt.err (!%p826_p1)
}
  0x20   : > { %s830_s11 = scalar_lea.vmem %s1027_s18, 256  ;;  %s913_s14 = smov [#allocation2]  }
  0x21   : > { %p831_p2 = scmp.ne.s32.totalorder %s1027_s18, %s830_s11  ;;  %s835_s15 = sshll.u32 %s913_s14, 4  ;;  %s836_s15 = int_to_ptr.vmem [resolvable:$false] %s835_s15 }
  0x22   : > { %s837_s17 = scalar_lea.vmem %s836_s15, 512  ;;  %p838_p11 = scmp.lt.s32.totalorder %s1027_s18, %s836_s15 }
  0x23   : > { %p833_p4 = pnand %p831_p2, %p817_p3  ;;  %p839_p5 = scmp.lt.s32.totalorder %s837_s17, %s830_s11 }
  0x25   : > { %p834_p12 = pneg %p833_p4  ;;  %p840_p8 = por %p839_p5, %p838_p11 }
  0x27   : > { %p841_p9 = pnand %p840_p8, %p834_p12 }
  0x29   : > { %844 = shalt.err (!%p841_p9)
}
  0x2a   : > { %769 = dma.hbm_to_vmem [thread:$0]  (!%p1023_p13), %s1019_s16, 256, %s1027_s18, %s213_s20  }
  0x2b   : > { %p1358_p0 = scmp.lt.s32.totalorder %s911_s24, 3  ;;  %p1359_p1 = scmp.ge.s32.totalorder %s911_s24, 1 }
  0x2d   : > { %p230_p3 = pnand %p1359_p1, %p1358_p0 }
  0x2e   : > { %s1061_s26 = sand.u32 (!%p230_p3), 1, %s903_s22  }
  0x2f   : > { %233 = sbr.rel (%p230_p3) target bundleno = 1031 (0x407), region = 44  ;;  %s716_s28 = sshll.u32 (!%p230_p3), %s1061_s26, 4 }
  0x30   : > { %s236_s29 = scalar_lea.sflag (!%p230_p3), [#allocation3], %s1061_s26  ;;  %s239_s19 = scalar_lea.vmem (!%p230_p3), [#allocation2], %s716_s28 }
  0x36   : > { %890 = dma.done.wait (%p999_p6), %s236_s29, 256  }
  0x37   : > { %892 = vsyncadd (%p999_p6), %s236_s29, 4294967040  ;;  %v1071_v0 = vld [vmem:[%s239_s19] sm:$0xff]  ;;  %s914_s16 = smov 112   ;;  %s915_s18 = smov 16   ;;  %v1077_v1 = vld [vmem:[%s239_s19 + $0x8] sm:$0xff]  ;;  %v281_v2 = vlaneseq  ;;  %v918_v25 = vmov 0.0  }
  0x38   : > { %299 = vrot.lane.b32.xlu1 %v1071_v0, %s914_s16  ;;  %277 = vrot.lane.b32.xlu0 %v1071_v0, %s915_s18  ;;  %s916_s8 = smov 1   ;;  %v718_v7 = vld [vmem:[%s1346_s1 + $0x1] ss:$8 sm:$0x3]  ;;  %s917_s11 = smov 127   ;;  %v919_v26 = vmov 0  }
  0x39   : > { %v288_v3 = vshrl.u32 %v281_v2, 7  ;;  %v1087_v4 = vand.u32 127, %v281_v2  ;;  %v270_v8 = vld [vmem:[%s1346_s1] ss:$8 sm:$0x3]  ;;  %466 = vmatprep.mubr.f32.mxu0 %v918_v25  ;;  %613 = vmatprep.mubr.f32.mxu1 %v918_v25  ;;  %vm398_vm4 = vcmask 588800  }
  0x3a   : > { %814 = vset.pattern.permute.xlu0 %v919_v26  ;;  %v392_v27 = vld [vmem:[%s1348_s3] sm:$0xff]  ;;  %s267_s14 = scalar_lea.vmem [#allocation5], %s716_s28  ;;  %s625_s20 = scalar_lea.sflag [#allocation4], %s1061_s26 }
  0x3b   : > { %v1089_v5 = vsub.s32 0, %v288_v3  ;;  %v1091_v6 = vsub.s32 1, %v288_v3  ;;  %vm303_vm0 = vcmp.lt.s32.totalorder %v1087_v4, 112  ;;  %vm283_vm1 = vcmp.lt.s32.totalorder %v1087_v4, 16  ;;  %s639_s15 = sshll.u32 %s267_s14, 4  ;;  %p1360_p11 = scmp.ne.s32.totalorder %s1355_s9, 0  ;;  %s1303_s15 = int_to_ptr.vmem [resolvable:$true] %s639_s15 }
  0x3c   : > { %301 = vrot.lane.b32.xlu1 %v1077_v1, %s914_s16  ;;  %279 = vrot.lane.b32.xlu0 %v1077_v1, %s915_s18  ;;  %v719_v30 = vld [vmem:[%s1346_s1 + $0x2] ss:$8 sm:$0x3]  ;;  %vm331_vm2 = vcmp.lt.s32.totalorder %v1087_v4, 1  ;;  %vm367_vm3 = vcmp.lt.s32.totalorder %v1087_v4, 127  ;;  %s920_s28 = smov [#allocation5]  }
  0x3d   : > { %v1101_v11 = vrot.slane %v718_v7, %v1091_v6  ;;  %v1105_v12 = vrot.slane %v270_v8, %v1089_v5  ;;  %v1115_v18 = vrot.slane %v270_v8, %v1091_v6  ;;  %v1127_v21 = vrot.slane %v718_v7, %v1089_v5  ;;  %v720_v52 = vld [vmem:[%s1346_s1 + $0x3] ss:$8 sm:$0x3]  ;;  %s849_s7 = sshll.u32 %s920_s28, 4  ;;  %s850_s7 = int_to_ptr.vmem [resolvable:$false] %s849_s7 }
  0x3e   : > { %v1157_v32 = vrot.slane %v719_v30, %v1089_v5  ;;  %v1160_v34 = vrot.slane %v719_v30, %v1091_v6  ;;  %v1186_v56 = vrot.slane %v720_v52, %v1089_v5  ;;  %v1189_v57 = vrot.slane %v720_v52, %v1091_v6  ;;  %s851_s12 = scalar_lea.vmem %s850_s7, 512  ;;  %p852_p7 = scmp.lt.s32.totalorder %s1303_s15, %s850_s7 }
  0x40   : > { %321 = vrot.lane.b32.xlu1 %v1071_v0, %s916_s8 }
  0x44   : > { %327 = vrot.lane.b32.xlu1 %v1077_v1, %s916_s8 }
  0xaa   : > { %v300_v9 = vpop.permute.xlu1 %299  ;;  %v278_v10 = vpop.permute.xlu0 %277 }
  0xae   : > { %v302_v13 = vpop.permute.xlu1 %301  ;;  %v280_v14 = vpop.permute.xlu0 %279 }
  0xaf   : > { %v305_v15 = vsel %vm303_vm0, %v302_v13, %v300_v9  ;;  %v285_v16 = vsel %vm283_vm1, %v280_v14, %v278_v10  ;;  %v284_v20 = vsel %vm283_vm1, %v278_v10, %v280_v14  ;;  %v304_v23 = vsel %vm303_vm0, %v300_v9, %v302_v13 }
  0xb0   : > { %v1112_v17 = vmul.f32 %v1101_v11, %v305_v15  ;;  %v1118_v19 = vmul.f32 %v1105_v12, %v285_v16  ;;  %v298_v22 = vmul.f32 %v1115_v18, %v284_v20  ;;  %v1136_v24 = vmul.f32 %v1127_v21, %v304_v23 }
  0xb2   : > { %329 = vrot.lane.b32.xlu1 %v1112_v17, %s916_s8  ;;  %319 = vrot.lane.b32.xlu0 %v1118_v19, %s916_s8  ;;  %v322_v28 = vpop.permute.xlu1 %321  ;;  %v738_v59 = vpack.c.bf16 %v1112_v17, %v1077_v1  ;;  %v740_v3 = vpack.c.bf16 %v1136_v24, %v1071_v0 }
  0xb6   : > { %357 = vrot.lane.b32.xlu1 %v1071_v0, %s917_s11  ;;  %325 = vrot.lane.b32.xlu0 %v298_v22, %s916_s8  ;;  %v328_v29 = vpop.permute.xlu1 %327 }
  0xb7   : > { %v333_v35 = vsel %vm331_vm2, %v322_v28, %v328_v29  ;;  %v336_v36 = vsel %vm331_vm2, %v328_v29, %v322_v28 }
  0xb8   : > { %v351_v40 = vmul.f32 %v1157_v32, %v336_v36  ;;  %v352_v43 = vmul.f32 %v1160_v34, %v333_v35 }
  0xba   : > { %363 = vrot.lane.b32.xlu1 %v1077_v1, %s917_s11  ;;  %323 = vrot.lane.b32.xlu0 %v1136_v24, %s916_s8 }
  0xbe   : > { %365 = vrot.lane.b32.xlu1 %v1112_v17, %s917_s11  ;;  %355 = vrot.lane.b32.xlu0 %v1118_v19, %s917_s11  ;;  %v391_v17 = vld [vmem:[%s1347_s2] sm:$0xff] }
  0xc2   : > { %361 = vrot.lane.b32.xlu0 %v298_v22, %s917_s11 }
  0xc6   : > { %359 = vrot.lane.b32.xlu0 %v1136_v24, %s917_s11 }
  0xca   : > { %395 = vperm.xlu0 %814, %v392_v27  }
 0x124   : > { %v320_v31 = vpop.permute.xlu0 %319  ;;  %v330_v33 = vpop.permute.xlu1 %329 }
 0x128   : > { %v326_v37 = vpop.permute.xlu0 %325  ;;  %v358_v44 = vpop.permute.xlu1 %357 }
 0x129   : > { %v332_v38 = vsel %vm331_vm2, %v320_v31, %v326_v37  ;;  %v335_v39 = vsel %vm331_vm2, %v326_v37, %v320_v31 }
 0x12a   : > { %v349_v41 = vmul.f32 %v1157_v32, %v335_v39  ;;  %v350_v42 = vmul.f32 %v1160_v34, %v332_v38 }
 0x12c   : > { %v324_v45 = vpop.permute.xlu0 %323  ;;  %v730_v46 = vpack.c.bf16 %v352_v43, %v350_v42  ;;  %v732_v47 = vpack.c.bf16 %v351_v40, %v349_v41  ;;  %v364_v58 = vpop.permute.xlu1 %363 }
 0x12d   : > { %v334_v48 = vsel %vm331_vm2, %v324_v45, %v330_v33  ;;  %v337_v49 = vsel %vm331_vm2, %v330_v33, %v324_v45  ;;  %v369_v60 = vsel %vm367_vm3, %v358_v44, %v364_v58  ;;  %v372_v61 = vsel %vm367_vm3, %v364_v58, %v358_v44 }
 0x12e   : > { %v353_v50 = vmul.f32 %v1157_v32, %v337_v49  ;;  %v354_v51 = vmul.f32 %v1160_v34, %v334_v48  ;;  %731 = vmatprep.subr.bf16.mxu0 %v730_v46  ;;  %v387_v1 = vmul.f32 %v1186_v56, %v369_v60  ;;  %v388_v5 = vmul.f32 %v1189_v57, %v372_v61 }
 0x12f   : > { %733 = vmatpush1.bf16.msra.mxu0 %v732_v47 }
 0x130   : > { %v356_v53 = vpop.permute.xlu0 %355  ;;  %v734_v54 = vpack.c.bf16 %v298_v22, %v354_v51  ;;  %v736_v55 = vpack.c.bf16 %v1118_v19, %v353_v50  ;;  %v366_v8 = vpop.permute.xlu1 %365 }
 0x132   : > { %735 = vmatprep.subr.bf16.mxu0 %v734_v54 }
 0x133   : > { %737 = vmatpush1.bf16.msra.mxu0 %v736_v55 }
 0x134   : > { %739 = vmatprep.subr.bf16.mxu0 %v738_v59  ;;  %v362_v62 = vpop.permute.xlu0 %361 }
 0x135   : > { %v368_v63 = vsel %vm367_vm3, %v356_v53, %v362_v62  ;;  %v371_v2 = vsel %vm367_vm3, %v362_v62, %v356_v53 }
 0x136   : > { %v385_v6 = vmul.f32 %v1186_v56, %v368_v63  ;;  %v386_v7 = vmul.f32 %v1189_v57, %v371_v2 }
 0x137   : > { %741 = vmatpush1.bf16.msra.mxu0 %v740_v3 }
 0x138   : > { %v360_v9 = vpop.permute.xlu0 %359  ;;  %v742_v10 = vpack.c.bf16 %v388_v5, %v386_v7  ;;  %v744_v13 = vpack.c.bf16 %v387_v1, %v385_v6 }
 0x139   : > { %v373_v14 = vsel %vm367_vm3, %v366_v8, %v360_v9  ;;  %v370_v15 = vsel %vm367_vm3, %v360_v9, %v366_v8 }
 0x13a   : > { %v390_v0 = vmul.f32 %v1189_v57, %v373_v14  ;;  %743 = vmatprep.subr.bf16.mxu0 %v742_v10  ;;  %v389_v16 = vmul.f32 %v1186_v56, %v370_v15 }
 0x13b   : > { %745 = vmatpush1.bf16.msra.mxu0 %v744_v13 }
 0x13c   : > { %418 = vmatprep.subr.mxu0 %v390_v0 }
 0x13f   : > { %419 = vmatpush1.msra.mxu0 %v389_v16 }
 0x140   : > { %721 = vmatmul.mubr.msk.f32.vlgmr.msra.gmra.mrb[0].mxu0 %vm398_vm4, %v391_v17 }
 0x149   : > { %v396_v19 = vpop.permute.xlu0 %395 }
 0x213   : > { %v468_v20 = vpop.f32.mrb[0].mxu0 }
 0x214   : > { %v469_v22 = vadd.f32 %v468_v20, %v396_v19  ;;  %v470_v23 = vpop.f32.mrb[1].mxu0 }
 0x215   : > { %v471_v25 = vadd.f32 %v470_v23, %v396_v19  ;;  %v539_v23 = vld [vmem:[%s1349_s4] sm:$0xff] }
 0x216   : > { %v1217_v24 = vmax.f32 %v469_v22, 0.0 }
 0x217   : > { %v474_v26 = vmax.f32 %v471_v25, 0.0 }
 0x218   : > { %483 = vrot.lane.b32.xlu0 %v1217_v24, %s914_s16  ;;  %475 = vrot.lane.b32.xlu1 %v1217_v24, %s915_s18 }
 0x21c   : > { %477 = vrot.lane.b32.xlu1 %v474_v26, %s915_s18 }
 0x220   : > { %485 = vrot.lane.b32.xlu1 %v474_v26, %s914_s16 }
 0x224   : > { %493 = vrot.lane.b32.xlu1 %v1217_v24, %s916_s8 }
 0x228   : > { %499 = vrot.lane.b32.xlu1 %v474_v26, %s916_s8 }
 0x28a   : > { %v476_v27 = vpop.permute.xlu1 %475  ;;  %v484_v33 = vpop.permute.xlu0 %483 }
 0x28e   : > { %v478_v28 = vpop.permute.xlu1 %477 }
 0x28f   : > { %v480_v29 = vsel %vm283_vm1, %v478_v28, %v476_v27  ;;  %v479_v31 = vsel %vm283_vm1, %v476_v27, %v478_v28 }
 0x290   : > { %v481_v30 = vmul.f32 %v480_v29, %v1105_v12  ;;  %v482_v37 = vmul.f32 %v479_v31, %v1115_v18 }
 0x292   : > { %491 = vrot.lane.b32.xlu0 %v481_v30, %s916_s8  ;;  %v486_v35 = vpop.permute.xlu1 %485 }
 0x293   : > { %v488_v36 = vsel %vm303_vm0, %v486_v35, %v484_v33  ;;  %v487_v39 = vsel %vm303_vm0, %v484_v33, %v486_v35 }
 0x294   : > { %v490_v38 = vmul.f32 %v488_v36, %v1101_v11  ;;  %v489_v12 = vmul.f32 %v487_v39, %v1127_v21  ;;  %v540_v11 = vld [vmem:[%s1350_s5] sm:$0xff] }
 0x296   : > { %497 = vrot.lane.b32.xlu0 %v482_v37, %s916_s8  ;;  %501 = vrot.lane.b32.xlu1 %v490_v38, %s916_s8  ;;  %v494_v18 = vpop.permute.xlu1 %493  ;;  %v754_v3 = vpack.c.bf16 %v490_v38, %v474_v26  ;;  %v756_v7 = vpack.c.bf16 %v489_v12, %v1217_v24 }
 0x29a   : > { %517 = vrot.lane.b32.xlu1 %v1217_v24, %s917_s11  ;;  %495 = vrot.lane.b32.xlu0 %v489_v12, %s916_s8  ;;  %v500_v21 = vpop.permute.xlu1 %499 }
 0x29b   : > { %v504_v41 = vsel %vm331_vm2, %v494_v18, %v500_v21  ;;  %v507_v42 = vsel %vm331_vm2, %v500_v21, %v494_v18 }
 0x29c   : > { %v511_v47 = vmul.f32 %v507_v42, %v1157_v32  ;;  %v512_v50 = vmul.f32 %v504_v41, %v1160_v34 }
 0x29e   : > { %523 = vrot.lane.b32.xlu1 %v474_v26, %s917_s11  ;;  %515 = vrot.lane.b32.xlu0 %v481_v30, %s917_s11 }
 0x2a2   : > { %525 = vrot.lane.b32.xlu1 %v490_v38, %s917_s11  ;;  %521 = vrot.lane.b32.xlu0 %v482_v37, %s917_s11 }
 0x2a6   : > { %519 = vrot.lane.b32.xlu0 %v489_v12, %s917_s11  ;;  %s729_s11 = sshll.u32 %s977_s25, 8  ;;  %s845_s25 = scalar_lea.vmem %s1303_s15, 256 }
 0x2a7   : > { %s1301_s19 = scalar_lea.hbm %s1351_s6, %s729_s11  ;;  %p846_p6 = scmp.ne.s32.totalorder %s1303_s15, %s845_s25 }
 0x2a8   : > { %p853_p10 = scmp.lt.s32.totalorder %s851_s12, %s845_s25 }
 0x2a9   : > { %p847_p12 = pnand %p846_p6, %p1360_p11 }
 0x2aa   : > { %543 = vperm.xlu0 %814, %v540_v11   ;;  %p854_p2 = por %p853_p10, %p852_p7 }
 0x2ab   : > { %p848_p13 = pneg %p847_p12 }
 0x2ad   : > { %p855_p4 = pnand %p854_p2, %p848_p13 }
 0x304   : > { %v492_v40 = vpop.permute.xlu0 %491 }
 0x308   : > { %v498_v43 = vpop.permute.xlu0 %497  ;;  %v502_v44 = vpop.permute.xlu1 %501 }
 0x309   : > { %v503_v45 = vsel %vm331_vm2, %v492_v40, %v498_v43  ;;  %v506_v46 = vsel %vm331_vm2, %v498_v43, %v492_v40 }
 0x30a   : > { %v509_v48 = vmul.f32 %v506_v46, %v1157_v32  ;;  %v510_v49 = vmul.f32 %v503_v45, %v1160_v34 }
 0x30c   : > { %v496_v51 = vpop.permute.xlu0 %495  ;;  %v518_v52 = vpop.permute.xlu1 %517  ;;  %v746_v53 = vpack.c.bf16 %v512_v50, %v510_v49  ;;  %v748_v54 = vpack.c.bf16 %v511_v47, %v509_v48 }
 0x30d   : > { %v505_v55 = vsel %vm331_vm2, %v496_v51, %v502_v44  ;;  %v508_v58 = vsel %vm331_vm2, %v502_v44, %v496_v51 }
 0x30e   : > { %v513_v59 = vmul.f32 %v508_v58, %v1157_v32  ;;  %v514_v60 = vmul.f32 %v505_v55, %v1160_v34  ;;  %747 = vmatprep.subr.bf16.mxu1 %v746_v53 }
 0x30f   : > { %749 = vmatpush1.bf16.msra.mxu1 %v748_v54 }
 0x310   : > { %v516_v61 = vpop.permute.xlu0 %515  ;;  %v524_v62 = vpop.permute.xlu1 %523  ;;  %v750_v63 = vpack.c.bf16 %v482_v37, %v514_v60  ;;  %v752_v2 = vpack.c.bf16 %v481_v30, %v513_v59 }
 0x311   : > { %v528_v1 = vsel %vm367_vm3, %v518_v52, %v524_v62  ;;  %v531_v5 = vsel %vm367_vm3, %v524_v62, %v518_v52 }
 0x312   : > { %751 = vmatprep.subr.bf16.mxu1 %v750_v63  ;;  %v535_v8 = vmul.f32 %v528_v1, %v1186_v56  ;;  %v536_v9 = vmul.f32 %v531_v5, %v1189_v57 }
 0x313   : > { %753 = vmatpush1.bf16.msra.mxu1 %v752_v2 }
 0x314   : > { %v522_v6 = vpop.permute.xlu0 %521  ;;  %755 = vmatprep.subr.bf16.mxu1 %v754_v3  ;;  %v526_v14 = vpop.permute.xlu1 %525 }
 0x315   : > { %v527_v32 = vsel %vm367_vm3, %v516_v61, %v522_v6  ;;  %v530_v34 = vsel %vm367_vm3, %v522_v6, %v516_v61 }
 0x316   : > { %v533_v10 = vmul.f32 %v527_v32, %v1186_v56  ;;  %v534_v13 = vmul.f32 %v530_v34, %v1189_v57 }
 0x317   : > { %757 = vmatpush1.bf16.msra.mxu1 %v756_v7 }
 0x318   : > { %v520_v15 = vpop.permute.xlu0 %519  ;;  %v758_v0 = vpack.c.bf16 %v536_v9, %v534_v13  ;;  %v760_v16 = vpack.c.bf16 %v535_v8, %v533_v10 }
 0x319   : > { %v532_v17 = vsel %vm367_vm3, %v526_v14, %v520_v15  ;;  %v529_v19 = vsel %vm367_vm3, %v520_v15, %v526_v14 }
 0x31a   : > { %v538_v20 = vmul.f32 %v532_v17, %v1189_v57  ;;  %759 = vmatprep.subr.bf16.mxu1 %v758_v0  ;;  %v537_v22 = vmul.f32 %v529_v19, %v1186_v56 }
 0x31b   : > { %761 = vmatpush1.bf16.msra.mxu1 %v760_v16 }
 0x31c   : > { %565 = vmatprep.subr.mxu1 %v538_v20 }
 0x31f   : > { %566 = vmatpush1.msra.mxu1 %v537_v22 }
 0x320   : > { %722 = vmatmul.mubr.msk.f32.vlgmr.msra.gmra.mrb[0].mxu1 %vm398_vm4, %v539_v23 }
 0x329   : > { %v544_v24 = vpop.permute.xlu0 %543 }
 0x3f3   : > { %v615_v25 = vpop.f32.mrb[0].mxu1 }
 0x3f4   : > { %v616_v4 = vadd.f32 %v615_v25, %v544_v24  ;;  %v617_v26 = vpop.f32.mrb[1].mxu1 }
 0x3f5   : > { %v618_v57 = vadd.f32 %v617_v26, %v544_v24 }
 0x3f6   : > { %v620_v27 = vmax.f32 %v616_v4, 0.0 }
 0x3f7   : > { %v621_v56 = vmax.f32 %v618_v57, 0.0 }
 0x3f8   : > { %622 = vst [vmem:[%s267_s14] sm:$0xff] %v620_v27 }
 0x3f9   : > { %623 = vst [vmem:[%s267_s14 + $0x8] sm:$0xff] %v621_v56 }
 0x3fa   : > { %858 = shalt.err (!%p855_p4)
}
 0x3fb   : > { %s859_s26 = scalar_lea.hbm %s1301_s19, 256  ;;  %s863_s8 = scalar_lea.hbm %s1351_s6, 512 }
 0x3fc   : > { %p860_p5 = scmp.ne.s32.totalorder %s1301_s19, %s859_s26  ;;  %p864_p0 = scmp.lt.u32.totalorder %s1301_s19, %s1351_s6 }
 0x3fd   : > { %p865_p1 = scmp.lt.u32.totalorder %s863_s8, %s859_s26  ;;  %p867_p6 = scmp.lt.u32.totalorder %s859_s26, %s1301_s19 }
 0x3fe   : > { %p861_p8 = pnand %p860_p5, %p1360_p11 }
 0x3ff   : > { %p866_p3 = por %p865_p1, %p864_p0 }
 0x400   : > { %p862_p9 = pneg %p861_p8 }
 0x401   : > { %p868_p12 = por %p867_p6, %p866_p3 }
 0x403   : > { %p869_p13 = pnand %p868_p12, %p862_p9 }
 0x405   : > { %872 = shalt.err (!%p869_p13)
}
 0x406   : > { %764 = dma.vmem_to_hbm [thread:$0]  (%p1360_p11), %s1303_s15, 256, %s1301_s19, %s625_s20  }
 0x407 PF: > { %s651_s14 = sand.u32 1, %s899_s21   ;;  %p1361_p7 = scmp.ne.s32.totalorder %s1356_s10, 0 }
 0x408   : > { %p1362_p10 = scmp.ge.s32.totalorder %s911_s24, 2  ;;  %s652_s17 = scalar_lea.sflag [#allocation4], %s651_s14 }
 0x40a   : > { %p771_p2 = pnand %p1362_p10, %p1361_p7 }
 0x40c   : > { %894 = dma.done.wait (!%p771_p2), %s652_s17, 256  }
 0x40d   : > { %896 = vsyncadd (!%p771_p2), %s652_s17, 4294967040  ;;  %p19_p4 = scmp.ge.s32.totalorder %s981_s27, 4   ;;  %s1363_s21 = smov %s903_s22 }
 0x40e   : > { %s1364_s22 = smov %s907_s23  ;;  %s1365_s23 = smov %s993_s30 }
 0x40f   : > { %s1366_s24 = smov %s981_s27  ;;  %21 = sbr.rel (!%p19_p4) target bundleno = 5 (0x5), region = 92 }
 0x416   :  { %657 = vsyncpa [#allocation3], 1 }
 0x417   :  { %659 = vsyncpa [#allocation3 + $0x1], 1 }
 0x418   :  { %660 = vsyncpa [#allocation4], 1 }
 0x419   :  { %662 = vsyncpa [#allocation4 + $0x1], 1 }

</bundles_post_ra>
